<compile_context>
chip_gen: v6e
topology: v6e:2x2x1
jax: 0.10.0
libtpu: 0.0.40
codegen_flags: <defaults>
</compile_context>

<pallas_src>
import numpy as np
import jax
import jax.numpy as jnp
from jax import lax
from jax.experimental import pallas as pl
from jax.experimental.pallas import tpu as pltpu

# ---- constants copied from the PyTorch module -------------------------------
M = 250
SQUARE_SIZE = round(M / 20)  # = 12 (same Python round as the reference)

POSITIONS = np.array([[0, 1], [0, 4], [0, 7],
                      [3, 0.65], [3, 2.65 + 0.5], [3, 4.65 + 1], [3, 6.65 + 1.5],
                      [6, 1], [6, 4], [6, 7]])
# Exactly as in the reference module: start_row / start_col are all zeros, so
# every detector window is the same [0:12, 0:12] patch.
START_COL = np.zeros(POSITIONS.shape[0], dtype=int)
START_ROW = np.zeros(POSITIONS.shape[0], dtype=int)
NUM_DET = POSITIONS.shape[0]  # 10

# ---- kernel tile geometry ----------------------------------------------------
PH, PW = 16, 128      # (sublane, lane)-aligned tile holding the 12x12 window
OUT_LANES = 128       # lane-dense output block; sliced back to NUM_DET outside
MAX_TB = 256          # samples per grid step (fits default scoped VMEM on v7x too)


# ---- Pallas kernel -----------------------------------------------------------
def imaging_kernel(ur_ref, ui_ref, out_ref):
    """One grid step processes TB samples.

    ur_ref, ui_ref : (TB, PH, PW) VMEM tiles; only [:, :12, :12] is nonzero
                     (everything else was zero-padded in the wrapper).
    out_ref        : (TB, OUT_LANES) output block for this grid step.
    """
    ur = ur_ref[...]
    ui = ui_ref[...]
    inten = ur * ur + ui * ui                     # |u|^2   (VPU, full tile)

    # Single 12x12 window sum per sample (zero padding contributes nothing).
    # All 10 detector windows are this identical value.
    s = jnp.sum(inten, axis=2)                    # (TB, PH)   lane reduce
    s = jnp.sum(s, axis=1, keepdims=True)         # (TB, 1)    sublane reduce

    # values row = [s]*10  =>  L2 norm = sqrt(10 * s^2); normalize via rsqrt (EUP).
    sumsq = s * s * float(NUM_DET)
    normed = s * lax.rsqrt(sumsq)                 # (TB, 1)
    out_ref[...] = jnp.broadcast_to(normed, out_ref.shape)


# ---- wrapper -----------------------------------------------------------------
def imaging_layer(u):
    """u: complex64 (B, H, W)  ->  float32 (B, 10), each row L2-normalized."""
    B, H, W = u.shape

    # Crop to the detector window BEFORE the real/imag split (avoids two full
    # (B, H, W) f32 copies in HBM), then zero-pad to the aligned kernel tile.
    h = min(H, SQUARE_SIZE)
    w = min(W, SQUARE_SIZE)
    u_win = u[:, :h, :w]
    ur = jnp.real(u_win).astype(jnp.float32)
    ui = jnp.imag(u_win).astype(jnp.float32)
    ur = jnp.pad(ur, ((0, 0), (0, PH - h), (0, PW - w)))
    ui = jnp.pad(ui, ((0, 0), (0, PH - h), (0, PW - w)))

    # Batch tiling: TB samples per grid step; pad batch to a multiple of TB.
    TB = min(B, MAX_TB)
    nb = pl.cdiv(B, TB)
    B_pad = nb * TB
    if B_pad != B:
        ur = jnp.pad(ur, ((0, B_pad - B), (0, 0), (0, 0)))
        ui = jnp.pad(ui, ((0, B_pad - B), (0, 0), (0, 0)))

    out_padded = pl.pallas_call(
        imaging_kernel,
        out_shape=jax.ShapeDtypeStruct((B_pad, OUT_LANES), jnp.float32),
        grid=(nb,),
        in_specs=[
            pl.BlockSpec((TB, PH, PW), lambda i: (i, 0, 0)),
            pl.BlockSpec((TB, PH, PW), lambda i: (i, 0, 0)),
        ],
        out_specs=pl.BlockSpec((TB, OUT_LANES), lambda i: (i, 0)),
        compiler_params=pltpu.CompilerParams(
            dimension_semantics=("parallel",)),
    )(ur, ui)

    # TODO(synk): the PyTorch forward also stashes intensity[0] into a global
    # numpy array (`inten = intensity[0].cpu().detach().numpy()`); that host-side
    # side effect has no Pallas equivalent and is intentionally omitted.
    return out_padded[:B, :NUM_DET]


# ---- test --------------------------------------------------------------------
if __name__ == "__main__":
    key = jax.random.PRNGKey(0)
    kr, ki = jax.random.split(key)

    B, H, W = 2, 16, 16   # small spatial extent (>= SQUARE_SIZE=12)
    u = (jax.random.normal(kr, (B, H, W), dtype=jnp.float32)
         + 1j * jax.random.normal(ki, (B, H, W), dtype=jnp.float32)
         ).astype(jnp.complex64)

    out = jax.block_until_ready(imaging_layer(u))
    assert out.shape == (B, NUM_DET) and out.dtype == jnp.float32

    # pure-JAX reference (mirrors the PyTorch forward exactly)
    inten = jnp.abs(u) ** 2
    vals = jnp.stack(
        [jnp.sum(inten[:, START_ROW[i]:START_ROW[i] + SQUARE_SIZE,
                          START_COL[i]:START_COL[i] + SQUARE_SIZE],
                 axis=(1, 2))
         for i in range(NUM_DET)],
        axis=1)
    ref = vals / jnp.sqrt(jnp.sum(vals * vals, axis=1, keepdims=True))

    np.testing.assert_allclose(np.asarray(out), np.asarray(ref),
                               rtol=1e-5, atol=1e-6)
    print("KERNEL_OK")
</pallas_src>

<mosaic_0001>
module attributes {stable_mosaic.version = 11 : i64} {
  func.func @imaging_kernel(%arg0: i32, %arg1: memref<2x16x128xf32, #tpu.memory_space<vmem>>, %arg2: memref<2x16x128xf32, #tpu.memory_space<vmem>>, %arg3: memref<2x128xf32, #tpu.memory_space<vmem>>) attributes {dimension_semantics = [#tpu.dimension_semantics<parallel>], iteration_bounds = array<i64: 1>, scalar_prefetch = 0 : i64, scratch_operands = 0 : i64, tpu.core_type = #tpu.core_type<tc>, window_params = [{transform_indices = @transform_0, window_bounds = array<i64: 2, 16, 128>}, {transform_indices = @transform_1, window_bounds = array<i64: 2, 16, 128>}, {transform_indices = @transform_2, window_bounds = array<i64: 2, 128>}]} {
    %c0 = arith.constant 0 : index
    %c0_0 = arith.constant 0 : index
    %c0_1 = arith.constant 0 : index
    %0 = vector.load %arg1[%c0, %c0_0, %c0_1] : memref<2x16x128xf32, #tpu.memory_space<vmem>>, vector<2x16x128xf32>
    %c0_2 = arith.constant 0 : index
    %c0_3 = arith.constant 0 : index
    %c0_4 = arith.constant 0 : index
    %1 = vector.load %arg2[%c0_2, %c0_3, %c0_4] : memref<2x16x128xf32, #tpu.memory_space<vmem>>, vector<2x16x128xf32>
    %2 = arith.mulf %0, %0 : vector<2x16x128xf32>
    %3 = arith.mulf %1, %1 : vector<2x16x128xf32>
    %4 = arith.addf %2, %3 : vector<2x16x128xf32>
    %cst = arith.constant dense<0.000000e+00> : vector<2x16xf32>
    %5 = vector.multi_reduction <add>, %4, %cst [2] : vector<2x16x128xf32> to vector<2x16xf32>
    %cst_5 = arith.constant dense<0.000000e+00> : vector<2xf32>
    %6 = vector.multi_reduction <add>, %5, %cst_5 [1] : vector<2x16xf32> to vector<2xf32>
    %7 = vector.shape_cast %6 : vector<2xf32> to vector<2x1xf32>
    %8 = arith.mulf %7, %7 : vector<2x1xf32>
    %cst_6 = arith.constant 1.000000e+01 : f32
    %9 = vector.broadcast %cst_6 : f32 to vector<2x1xf32>
    %10 = arith.mulf %8, %9 : vector<2x1xf32>
    %11 = math.rsqrt %10 : vector<2x1xf32>
    %12 = arith.mulf %7, %11 : vector<2x1xf32>
    %13 = vector.shape_cast %12 : vector<2x1xf32> to vector<2x1xf32>
    %14 = vector.broadcast %13 : vector<2x1xf32> to vector<2x128xf32>
    %c0_7 = arith.constant 0 : index
    %c0_8 = arith.constant 0 : index
    %15 = vector.load %arg3[%c0_7, %c0_8] : memref<2x128xf32, #tpu.memory_space<vmem>>, vector<2x128xf32>
    tpu.vector_store %arg3[%c0_7, %c0_8], %14 {strides = array<i32>} : memref<2x128xf32, #tpu.memory_space<vmem>>, vector<2x128xf32>,
    return
  }
  func.func @transform_0(%arg0: i32) -> (i32, i32, i32) {
    %c0_i32 = arith.constant 0 : i32
    %c0_i32_0 = arith.constant 0 : i32
    %c0_i32_1 = arith.constant 0 : i32
    return %arg0, %c0_i32, %c0_i32_0 : i32, i32, i32
  }
  func.func @transform_1(%arg0: i32) -> (i32, i32, i32) {
    %c0_i32 = arith.constant 0 : i32
    %c0_i32_0 = arith.constant 0 : i32
    %c0_i32_1 = arith.constant 0 : i32
    return %arg0, %c0_i32, %c0_i32_0 : i32, i32, i32
  }
  func.func @transform_2(%arg0: i32) -> (i32, i32) {
    %c0_i32 = arith.constant 0 : i32
    %c0_i32_0 = arith.constant 0 : i32
    return %arg0, %c0_i32 : i32, i32
  }
}

</mosaic_0001>

<bundles_post_ra>
// kernel: tpu_custom_call.1
= control target key start
LH: loop header
LB: loop body
LE: loop exit
PB: predicated region body
PF: predicated region fallthrough
CT: control target
= control target key end

     0   :  { %7 = vsyncpa [#allocation3], 0  ;;  %s224_s0 = inlined_call_operand.hbm [shape: f32[2,16,128], index: 0, kind: input, shape index: {}]   ;;  %s225_s1 = inlined_call_operand.hbm [shape: f32[2,16,128], index: 1, kind: input, shape index: {}]   ;;  %s226_s2 = inlined_call_operand.hbm [shape: f32[2,128], index: 2, kind: output, shape index: {}]  }
   0x1   :  { %8 = vsyncpa [#allocation6], 0 }
   0x2   :  { %9 = vsyncpa [#allocation4], 0  ;;  %s195_s9 = smov [#allocation2]  }
   0x3   :  { %s15_s10 = sshll.u32 %s195_s9, 4  ;;  %s16_s10 = int_to_ptr.vmem [resolvable:$true] %s15_s10 }
   0x4   :  { %s137_s11 = scalar_lea.vmem %s16_s10, 512  ;;  %p142_p1 = scmp.lt.s32.totalorder %s16_s10, %s16_s10 }
   0x5   :  { %p138_p0 = scmp.ne.s32.totalorder %s16_s10, %s137_s11  ;;  %p143_p2 = scmp.lt.s32.totalorder %s137_s11, %s137_s11 }
   0x7   :  { %p144_p3 = por %p143_p2, %p142_p1 }
   0x9   :  { %p145_p4 = pnand %p144_p3, %p138_p0 }
   0xb   :  { %148 = shalt.err (!%p145_p4)
}
   0xc   :  { %s196_s12 = smov 128   ;;  %s197_s13 = smov 8  }
   0xd   :  { %21 = dma.hbm_to_vmem [thread:$0]  %s224_s0, 512, %s16_s10, [#allocation3], %s196_s12, %s196_s12, %s197_s13  }
   0xe   :  { %s198_s16 = smov [#allocation5]  }
   0xf   :  { %s27_s17 = sshll.u32 %s198_s16, 4  ;;  %s28_s17 = int_to_ptr.vmem [resolvable:$true] %s27_s17 }
  0x10   :  { %s157_s18 = scalar_lea.vmem %s28_s17, 512  ;;  %p162_p6 = scmp.lt.s32.totalorder %s28_s17, %s28_s17 }
  0x11   :  { %p158_p5 = scmp.ne.s32.totalorder %s28_s17, %s157_s18  ;;  %p163_p7 = scmp.lt.s32.totalorder %s157_s18, %s157_s18 }
  0x13   :  { %p164_p8 = por %p163_p7, %p162_p6 }
  0x15   :  { %p165_p9 = pnand %p164_p8, %p158_p5 }
  0x17   :  { %168 = shalt.err (!%p165_p9)
}
  0x18   :  { %33 = dma.hbm_to_vmem [thread:$0]  %s225_s1, 512, %s28_s17, [#allocation6], %s196_s12, %s196_s12, %s197_s13  }
  0x19   :  { %189 = dma.done.wait [#allocation3], 512  }
  0x1a   :  { %190 = vsyncadd [#allocation3], 4294966784 }
  0x1b   :  { %191 = dma.done.wait [#allocation6], 512  }
  0x1c   :  { %192 = vsyncadd [#allocation6], 4294966784  ;;  %v42_v0 = vld [vmem:[#allocation2 + $0x10] sm:$0xff]  ;;  %v40_v2 = vld [vmem:[#allocation2] sm:$0xff]  ;;  %v72_v20 = vlaneseq  ;;  %vm83_vm0 = vcmask 130112   ;;  %vm94_vm1 = vcmask 1041409  }
  0x1d   :  { %v46_v1 = vld [vmem:[#allocation5 + $0x10] sm:$0xff]  ;;  %v50_v3 = vmul.f32 %v42_v0, %v42_v0  ;;  %v44_v5 = vld [vmem:[#allocation5] sm:$0xff]  ;;  %v48_v6 = vmul.f32 %v40_v2, %v40_v2  ;;  %v43_v7 = vld [vmem:[#allocation2 + $0x18] sm:$0xff]  ;;  %vm97_vm2 = vcmask 123904   ;;  %s199_s0 = smov [#allocation7]  }
  0x1e   :  { %v54_v4 = vmul.f32 %v46_v1, %v46_v1  ;;  %v47_v8 = vld [vmem:[#allocation5 + $0x18] sm:$0xff]  ;;  %v52_v9 = vmul.f32 %v44_v5, %v44_v5  ;;  %v51_v10 = vmul.f32 %v43_v7, %v43_v7  ;;  %v41_v12 = vld [vmem:[#allocation2 + $0x8] sm:$0xff]  ;;  %v73_v21 = vand.u32 127, %v72_v20  ;;  %s112_s1 = sshll.u32 %s199_s0, 4  ;;  %s113_s1 = int_to_ptr.vmem [resolvable:$true] %s112_s1 }
  0x1f   :  { %v55_v11 = vmul.f32 %v47_v8, %v47_v8  ;;  %v45_v13 = vld [vmem:[#allocation5 + $0x8] sm:$0xff]  ;;  %v49_v15 = vmul.f32 %v41_v12, %v41_v12  ;;  %v75_v22 = vshrl.u32 %v72_v20, 7  ;;  %s169_s21 = scalar_lea.vmem %s113_s1, 32  ;;  %p174_p11 = scmp.lt.s32.totalorder %s113_s1, %s113_s1 }
  0x20   :  { %v58_v14 = vadd.f32 %v54_v4, %v50_v3  ;;  %v53_v16 = vmul.f32 %v45_v13, %v45_v13  ;;  %v56_v17 = vadd.f32 %v52_v9, %v48_v6  ;;  %v78_v23 = vadd.s32 4294967288, %v73_v21  ;;  %p170_p10 = scmp.ne.s32.totalorder %s113_s1, %s169_s21  ;;  %p175_p12 = scmp.lt.s32.totalorder %s169_s21, %s169_s21 }
  0x21   :  { %v59_v18 = vadd.f32 %v55_v11, %v51_v10  ;;  %v76_v25 = vsub.s32 %v73_v21, %v75_v22 }
  0x22   :  { %64 = vadd.xlane.f32.xlu1 %v58_v14  ;;  %60 = vadd.xlane.f32.xlu0 %v56_v17  ;;  %v57_v19 = vadd.f32 %v53_v16, %v49_v15  ;;  %v81_v27 = vsub.s32 %v78_v23, %v75_v22  ;;  %p176_p13 = por %p175_p12, %p174_p11 }
  0x24   :  { %p177_p0 = pnand %p176_p13, %p170_p10 }
  0x26   :  { %66 = vadd.xlane.f32.xlu1 %v59_v18  ;;  %62 = vadd.xlane.f32.xlu0 %v57_v19 }
  0xab   :  { %v65_v24 = vpop.xlane.xlu1 %64  ;;  %v61_v26 = vpop.xlane.xlu0 %60 }
  0xac   :  { %v88_v29 = vrot.slane %v65_v24, %v76_v25  ;;  %v77_v32 = vrot.slane %v61_v26, %v76_v25 }
  0xaf   :  { %v67_v28 = vpop.xlane.xlu1 %66  ;;  %v63_v31 = vpop.xlane.xlu0 %62 }
  0xb0   :  { %v92_v30 = vrot.slane %v67_v28, %v81_v27  ;;  %v82_v33 = vrot.slane %v63_v31, %v81_v27 }
  0xb2   :  { %v93_v34 = vsel %vm83_vm0, %v92_v30, %v88_v29  ;;  %v84_v35 = vsel %vm83_vm0, %v82_v33, %v77_v32 }
  0xb3   :  { %v95_v36 = vsel %vm94_vm1, %v93_v34, %v84_v35 }
  0xb4   :  { %v98_v37 = vsel %vm97_vm2, %v95_v36, 0.0 }
  0xb5   :  { %99 = vadd.xlane.f32.xlu0 %v98_v37 }
 0x13e   :  { %v100_v38 = vpop.xlane.xlu0 %99 }
 0x13f   :  { %v101_v39 = vmul.f32 %v100_v38, %v100_v38 }
 0x141   :  { %v102_v40 = vmul.f32 10.0, %v101_v39 }
 0x143   :  { %127 = vrsqrt.f32 %v102_v40 }
 0x150   :  { %v128_v41 = vpop.eup %127 }
 0x151   :  { %v104_v42 = vmul.f32 %v128_v41, %v100_v38 }
 0x153   :  { %105 = vst [vmem:[#allocation7] sm:$0x3] %v104_v42 }
 0x154   :  { %180 = shalt.err (!%p177_p0)
}
 0x155   :  { %115 = dma.vmem_to_hbm [thread:$0]  %s113_s1, 32, %s226_s2, [#allocation4]  }
 0x156   :  { %193 = dma.done.wait [#allocation4], 32  }
 0x157   :  { %194 = vsyncadd [#allocation4], 4294967264 }
 0x158   :  { %119 = vsyncpa [#allocation3], 1 }
 0x159   :  { %120 = vsyncpa [#allocation6], 1 }
 0x15a   :  { %121 = vsyncpa [#allocation4], 1 }

</bundles_post_ra>
